<compile_context>
chip_gen: v5e
topology: v5e:2x2
jax: 0.10.0
libtpu: 0.0.40
codegen_flags: <defaults>
</compile_context>

<pallas_src>
import numpy as np
import jax
import jax.numpy as jnp
from jax.experimental import pallas as pl
from jax.experimental.pallas import tpu as pltpu


def _make_kernel(K, hd, TILE, compute_vecs):
    KH = K * hd

    def kernel(*refs):
        if compute_vecs:
            (xs_ref, xvh_ref, xvec_ref, maskm_ref, maskT_ref,
             ws_ref, wv_ref, e2x_ref, es_ref, bias_ref,
             caps_ref, vecs_ref, b_scr, s_scr, v_scr) = refs
        else:
            (xs_ref, xvh_ref, maskm_ref, maskT_ref,
             ws_ref, wv_ref, e2x_ref, es_ref, bias_ref,
             caps_ref, b_scr, s_scr, v_scr) = refs
            xvec_ref = None
            vecs_ref = None

        it = pl.program_id(0)          # routing iteration
        t = pl.program_id(1)           # node tile
        last_it = pl.num_programs(0) - 1
        last_t = pl.num_programs(1) - 1

        # ------- init on first grid step / first iteration -------------------
        @pl.when(jnp.logical_and(it == 0, t == 0))
        def _():
            caps_ref[...] = jnp.zeros_like(caps_ref)
            if compute_vecs:
                vecs_ref[...] = jnp.zeros_like(vecs_ref)

        @pl.when(it == 0)
        def _():
            b_scr[t] = jnp.zeros((K, TILE), jnp.float32)

        # ------- u_hat for this node tile (recomputed per routing pass) ------
        # transposed / lane-dense: rows = capsule*hd + h, lanes = node rows
        u_s = jnp.dot(ws_ref[...], xs_ref[...],
                      preferred_element_type=jnp.float32)           # [KH, TILE]
        u_v = jnp.dot(wv_ref[...], xvh_ref[...],
                      preferred_element_type=jnp.float32)           # [KH, TILE]
        u = jnp.concatenate([u_s, u_v], axis=0)                     # [2KH, TILE]

        # ------- agreement update of routing logits (skip at it == 0) --------
        @pl.when(it > 0)
        def _():
            v_prev = v_scr[...]                                     # [2KH, B]
            v_node = jnp.dot(v_prev[:KH, :].astype(jnp.bfloat16),
                             maskT_ref[...],
                             preferred_element_type=jnp.float32)    # [KH, TILE]
            prod = (u_s * v_node).astype(jnp.bfloat16)
            delta = jnp.dot(es_ref[...], prod,
                            preferred_element_type=jnp.float32)     # [K, TILE]
            b_scr[t] = b_scr[t] + delta

        # ------- softmax over K logits (sublane axis, lanes stay dense) ------
        b_cur = b_scr[t]                                            # [K, TILE]
        m = jnp.max(b_cur, axis=0, keepdims=True)
        e = jnp.exp(b_cur - m)
        c = e * pl.reciprocal(jnp.sum(e, axis=0, keepdims=True), approx=True)

        # ------- weighted predictions, per-graph reduce over this tile -------
        c_exp = jnp.dot(e2x_ref[...], c.astype(jnp.bfloat16),
                        preferred_element_type=jnp.float32)         # [2KH, TILE]
        weighted = (c_exp * u).astype(jnp.bfloat16)
        s_contrib = jnp.dot(weighted, maskm_ref[...],
                            preferred_element_type=jnp.float32)     # [2KH, B]

        @pl.when(t == 0)
        def _():
            s_scr[...] = jnp.zeros_like(s_scr)
        s_scr[...] = s_scr[...] + s_contrib

        # ------- routed secondary vectors use the FINAL coupling coeffs ------
        if compute_vecs:
            @pl.when(it == last_it)
            def _():
                xv = xvec_ref[...]                                  # [C3, TILE]
                pieces = []
                for k in range(K):                                  # K is small, static
                    w_k = (c[k:k + 1, :] * xv).astype(jnp.bfloat16)
                    pieces.append(jnp.dot(w_k, maskm_ref[...],
                                          preferred_element_type=jnp.float32))
                vecs_ref[...] = vecs_ref[...] + jnp.concatenate(pieces, axis=0)

        # ------- per-graph squash at the end of each routing pass ------------
        @pl.when(t == last_t)
        def _():
            s = s_scr[...] + bias_ref[...]                          # [2KH, B]
            es_f = es_ref[...].astype(jnp.float32)                  # [K, KH]
            e2r = jnp.concatenate([es_f, es_f], axis=1)             # [K, 2KH]
            n2 = jnp.dot(e2r, s * s,
                         preferred_element_type=jnp.float32)        # [K, B]
            scale = n2 * pl.reciprocal((1.0 + n2) * (jnp.sqrt(n2) + 1e-8),
                                       approx=True)
            v = jnp.dot(e2x_ref[...].astype(jnp.float32), scale,
                        preferred_element_type=jnp.float32) * s     # [2KH, B]
            v_scr[...] = v

        @pl.when(jnp.logical_and(t == last_t, it == last_it))
        def _():
            caps_ref[...] = v_scr[...]

    return kernel


def secondary_capsule_forward(x, x_vectors, batch, W_scalar, W_vector, bias,
                              routing_iterations, num_graphs=None):
    N, P, D = x.shape
    K, half, hd = W_scalar.shape
    assert D == 2 * half
    if num_graphs is None:
        # TODO(synk): this forces a host sync and breaks under jit; prefer
        # passing num_graphs as a static argument (done in __main__ below).
        num_graphs = int(jnp.max(batch)) + 1
    B = num_graphs
    NP = N * P
    KH = K * hd
    KH2 = 2 * KH
    R = int(routing_iterations)
    compute_vecs = x_vectors is not None
    C = x_vectors.shape[1] if compute_vecs else 1
    C3 = 3 * C

    f32, bf16 = jnp.float32, jnp.bfloat16

    # ---- generation-aware tile sizing ---------------------------------------
    try:
        vmem_cap = int(pltpu.get_tpu_info().vmem_capacity_bytes)
    except Exception:
        vmem_cap = 64 << 20                       # v7x-safe fallback
    # rough resident bytes per node column (f32 intermediates + bf16 casts +
    # double-buffered input tiles + routing-logit scratch)
    bytes_per_col = (4 * (4 * KH2 + 2 * KH + 4 * K)
                     + 2 * (KH2 + KH + K)
                     + 4 * (D + 2 * B + (C3 if compute_vecs else 0))
                     + 4 * 8)
    budget = int(0.4 * vmem_cap)
    tile_cap = max(128, min(8192, (budget // max(bytes_per_col, 1)) // 128 * 128))
    TILE = int(min(tile_cap, ((NP + 127) // 128) * 128))
    T = -(-NP // TILE)
    NP_pad = T * TILE
    pad = NP_pad - NP

    # ---- inputs in transposed, lane-dense layout (nodes on the lane axis) ---
    x_flat = x.reshape(NP, D).astype(f32)
    xs_T = jnp.pad(x_flat[:, :half].T, ((0, 0), (0, pad))).astype(bf16)   # [half, NP_pad]
    xvh_T = jnp.pad(x_flat[:, half:].T, ((0, 0), (0, pad))).astype(bf16)  # [half, NP_pad]

    batch_np = jnp.repeat(batch.astype(jnp.int32), P)                     # [NP]
    mask_np = jax.nn.one_hot(batch_np, B, dtype=f32)                      # [NP, B]
    mask_np = jnp.pad(mask_np, ((0, pad), (0, 0))).astype(bf16)           # [NP_pad, B]
    maskT_np = mask_np.T                                                  # [B, NP_pad]

    # packed transform weights: row = capsule*hd + h, col = input feature
    WsT = jnp.transpose(W_scalar.astype(f32), (0, 2, 1)).reshape(KH, half).astype(bf16)
    WvT = jnp.transpose(W_vector.astype(f32), (0, 2, 1)).reshape(KH, half).astype(bf16)

    E_col = jnp.kron(jnp.eye(K, dtype=f32), jnp.ones((hd, 1), f32))       # [KH, K]
    E2_expand = jnp.concatenate([E_col, E_col], axis=0).astype(bf16)      # [2KH, K]
    Es = jnp.kron(jnp.eye(K, dtype=f32), jnp.ones((1, hd), f32)).astype(bf16)  # [K, KH]

    bias_f = bias.astype(f32)
    bias_T = jnp.concatenate([bias_f[:, :hd].reshape(KH, 1),
                              bias_f[:, hd:].reshape(KH, 1)], axis=0)     # [2KH, 1]

    def const_spec(shape):
        return pl.BlockSpec(shape, lambda i, t: (0, 0))

    inputs = [xs_T, xvh_T]
    in_specs = [pl.BlockSpec((half, TILE), lambda i, t: (0, t)),
                pl.BlockSpec((half, TILE), lambda i, t: (0, t))]
    if compute_vecs:
        xv_np = jnp.repeat(x_vectors.astype(f32).reshape(N, C3), P, axis=0)  # [NP, C3]
        xvec_T = jnp.pad(xv_np.T, ((0, 0), (0, pad)))                        # [C3, NP_pad]
        inputs.append(xvec_T)
        in_specs.append(pl.BlockSpec((C3, TILE), lambda i, t: (0, t)))
    inputs += [mask_np, maskT_np, WsT, WvT, E2_expand, Es, bias_T]
    in_specs += [pl.BlockSpec((TILE, B), lambda i, t: (t, 0)),
                 pl.BlockSpec((B, TILE), lambda i, t: (0, t)),
                 const_spec((KH, half)), const_spec((KH, half)),
                 const_spec((KH2, K)), const_spec((K, KH)),
                 const_spec((KH2, 1))]

    out_shape = [jax.ShapeDtypeStruct((KH2, B), f32)]
    out_specs = [pl.BlockSpec((KH2, B), lambda i, t: (0, 0))]
    if compute_vecs:
        out_shape.append(jax.ShapeDtypeStruct((K * C3, B), f32))
        out_specs.append(pl.BlockSpec((K * C3, B), lambda i, t: (0, 0)))

    scratch_shapes = [
        pltpu.VMEM((T, K, TILE), f32),   # routing logits per node (persist over iters)
        pltpu.VMEM((KH2, B), f32),       # per-graph s accumulator
        pltpu.VMEM((KH2, B), f32),       # per-graph squashed v from previous iteration
    ]

    kernel = _make_kernel(K, hd, TILE, compute_vecs)

    results = pl.pallas_call(
        kernel,
        out_shape=tuple(out_shape),
        grid_spec=pltpu.PrefetchScalarGridSpec(
            num_scalar_prefetch=0,
            grid=(R, T),
            in_specs=in_specs,
            out_specs=tuple(out_specs),
            scratch_shapes=scratch_shapes),
        compiler_params=pltpu.CompilerParams(
            dimension_semantics=("arbitrary", "arbitrary"),
            vmem_limit_bytes=int(0.8 * vmem_cap)),
    )(*inputs)

    caps_packed = results[0].T                                            # [B, 2KH]
    caps = jnp.concatenate([caps_packed[:, :KH].reshape(B, K, hd),
                            caps_packed[:, KH:].reshape(B, K, hd)], axis=-1)
    if not compute_vecs:
        return caps, None
    vecs = results[1].T.reshape(B, K, C, 3)
    return caps, vecs


def _reference_numpy(x, x_vectors, batch, W_scalar, W_vector, bias, out_caps, out_dim, R):
    """Direct float64 translation of the PyTorch forward (per-graph loop)."""
    x = np.asarray(x, np.float64); xv = np.asarray(x_vectors, np.float64)
    Ws = np.asarray(W_scalar, np.float64); Wv = np.asarray(W_vector, np.float64)
    bias = np.asarray(bias, np.float64); batch = np.asarray(batch)
    hd = out_dim // 2
    Bsz = int(batch.max()) + 1
    caps_out, vecs_out = [], []
    for b in range(Bsz):
        idx = np.where(batch == b)[0]
        if idx.size == 0:
            continue
        xb, xvb = x[idx], xv[idx]
        nodes, P, D = xb.shape
        sp, vp = xb[:, :, :D // 2], xb[:, :, D // 2:]
        u_hat = np.zeros((nodes, P, out_caps, out_dim))
        for i in range(out_caps):
            u_hat[:, :, i, :hd] = sp @ Ws[i]
            u_hat[:, :, i, hd:] = vp @ Wv[i]
        u = u_hat.reshape(-1, out_caps, out_dim)
        b_ij = np.zeros((u.shape[0], out_caps))
        c = None
        for it in range(R):
            e = np.exp(b_ij - b_ij.max(axis=1, keepdims=True))
            c = e / e.sum(axis=1, keepdims=True)
            s = (c[:, :, None] * u).sum(axis=0) + bias
            n2 = (s ** 2).sum(axis=1, keepdims=True)
            v = n2 / (1 + n2) * s / (np.sqrt(n2) + 1e-8)
            if it < R - 1:
                b_ij = b_ij + (u[:, :, :hd] * v[None, :, :hd]).sum(axis=2)
        caps_out.append(v)
        c_r = c.reshape(nodes, P, out_caps)
        Cc = xvb.shape[1]
        rv = np.zeros((out_caps, Cc, 3))
        for k in range(out_caps):
            w = c_r[:, :, k][:, :, None, None]
            ev = np.broadcast_to(xvb[:, None, :, :], (nodes, P, Cc, 3))
            rv[k] = (w * ev).sum(axis=(0, 1))
        vecs_out.append(rv)
    return np.stack(caps_out), np.stack(vecs_out)


if __name__ == "__main__":
    key = jax.random.PRNGKey(0)
    N, P, in_dim = 16, 8, 16                # total nodes, primary caps per node, primary dim
    out_caps, out_dim, routing_iterations = 4, 8, 3
    C = 6                                    # vector channels of x_vectors
    num_graphs = 3
    kx, kv, kws, kwv = jax.random.split(key, 4)
    x = jax.random.normal(kx, (N, P, in_dim), dtype=jnp.float32)
    x_vectors = jax.random.normal(kv, (N, C, 3), dtype=jnp.float32)
    batch = jnp.array([0] * 6 + [1] * 5 + [2] * 5, dtype=jnp.int32)  # 3 graphs, all non-empty
    # deterministic parameter init mirroring __init__ (randn weights, zero bias)
    W_scalar = jax.random.normal(kws, (out_caps, in_dim // 2, out_dim // 2), dtype=jnp.float32)
    W_vector = jax.random.normal(kwv, (out_caps, in_dim // 2, out_dim // 2), dtype=jnp.float32)
    bias = jnp.zeros((out_caps, out_dim), dtype=jnp.float32)

    caps, vecs = secondary_capsule_forward(x, x_vectors, batch, W_scalar, W_vector,
                                           bias, routing_iterations, num_graphs=num_graphs)
    caps, vecs = jax.block_until_ready((caps, vecs))

    ref_caps, ref_vecs = _reference_numpy(x, x_vectors, batch, W_scalar, W_vector,
                                          bias, out_caps, out_dim, routing_iterations)
    assert caps.shape == (num_graphs, out_caps, out_dim) and vecs.shape == (num_graphs, out_caps, C, 3)
    err_c = np.max(np.abs(np.asarray(caps, np.float64) - ref_caps)) / (np.max(np.abs(ref_caps)) + 1.0)
    err_v = np.max(np.abs(np.asarray(vecs, np.float64) - ref_vecs)) / (np.max(np.abs(ref_vecs)) + 1.0)
    assert err_c < 5e-2 and err_v < 5e-2, (err_c, err_v)
    print("KERNEL_OK")
</pallas_src>

<mosaic_0001>
module attributes {stable_mosaic.version = 11 : i64} {
  func.func @kernel(%arg0: i32, %arg1: i32, %arg2: memref<8x128xbf16, #tpu.memory_space<vmem>>, %arg3: memref<8x128xbf16, #tpu.memory_space<vmem>>, %arg4: memref<18x128xf32, #tpu.memory_space<vmem>>, %arg5: memref<128x3xbf16, #tpu.memory_space<vmem>>, %arg6: memref<3x128xbf16, #tpu.memory_space<vmem>>, %arg7: memref<16x8xbf16, #tpu.memory_space<vmem>>, %arg8: memref<16x8xbf16, #tpu.memory_space<vmem>>, %arg9: memref<32x4xbf16, #tpu.memory_space<vmem>>, %arg10: memref<4x16xbf16, #tpu.memory_space<vmem>>, %arg11: memref<32x1xf32, #tpu.memory_space<vmem>>, %arg12: memref<32x3xf32, #tpu.memory_space<vmem>>, %arg13: memref<72x3xf32, #tpu.memory_space<vmem>>, %arg14: memref<1x4x128xf32, #tpu.memory_space<vmem>>, %arg15: memref<32x3xf32, #tpu.memory_space<vmem>>, %arg16: memref<32x3xf32, #tpu.memory_space<vmem>>) attributes {dimension_semantics = [#tpu.dimension_semantics<arbitrary>, #tpu.dimension_semantics<arbitrary>], iteration_bounds = array<i64: 3, 1>, scalar_prefetch = 0 : i64, scratch_operands = 3 : i64, tpu.core_type = #tpu.core_type<tc>, window_params = [{transform_indices = @transform_0, window_bounds = array<i64: 8, 128>}, {transform_indices = @transform_1, window_bounds = array<i64: 8, 128>}, {transform_indices = @transform_2, window_bounds = array<i64: 18, 128>}, {transform_indices = @transform_3, window_bounds = array<i64: 128, 3>}, {transform_indices = @transform_4, window_bounds = array<i64: 3, 128>}, {pipeline_mode = #tpu.pipeline_mode<synchronous>, transform_indices = @transform_5, window_bounds = array<i64: 16, 8>}, {pipeline_mode = #tpu.pipeline_mode<synchronous>, transform_indices = @transform_6, window_bounds = array<i64: 16, 8>}, {pipeline_mode = #tpu.pipeline_mode<synchronous>, transform_indices = @transform_7, window_bounds = array<i64: 32, 4>}, {pipeline_mode = #tpu.pipeline_mode<synchronous>, transform_indices = @transform_8, window_bounds = array<i64: 4, 16>}, {pipeline_mode = #tpu.pipeline_mode<synchronous>, transform_indices = @transform_9, window_bounds = array<i64: 32, 1>}, {pipeline_mode = #tpu.pipeline_mode<synchronous>, transform_indices = @transform_10, window_bounds = array<i64: 32, 3>}, {pipeline_mode = #tpu.pipeline_mode<synchronous>, transform_indices = @transform_11, window_bounds = array<i64: 72, 3>}]} {
    %c0_i32 = arith.constant 0 : i32
    %0 = arith.cmpi eq, %arg0, %c0_i32 : i32
    %c0_i32_0 = arith.constant 0 : i32
    %1 = arith.cmpi eq, %arg1, %c0_i32_0 : i32
    %2 = arith.andi %0, %1 : i1
    %3 = arith.extui %2 : i1 to i32
    %c0_i32_1 = arith.constant 0 : i32
    %4 = arith.cmpi ne, %3, %c0_i32_1 : i32
    scf.if %4 {
      %cst_36 = arith.constant 0.000000e+00 : f32
      %55 = vector.broadcast %cst_36 : f32 to vector<32x3xf32>
      %c0_37 = arith.constant 0 : index
      %c0_38 = arith.constant 0 : index
      %56 = vector.load %arg12[%c0_37, %c0_38] : memref<32x3xf32, #tpu.memory_space<vmem>>, vector<32x3xf32>
      tpu.vector_store %arg12[%c0_37, %c0_38], %55 {strides = array<i32>} : memref<32x3xf32, #tpu.memory_space<vmem>>, vector<32x3xf32>,
      %cst_39 = arith.constant 0.000000e+00 : f32
      %57 = vector.broadcast %cst_39 : f32 to vector<72x3xf32>
      %c0_40 = arith.constant 0 : index
      %c0_41 = arith.constant 0 : index
      %58 = vector.load %arg13[%c0_40, %c0_41] : memref<72x3xf32, #tpu.memory_space<vmem>>, vector<72x3xf32>
      tpu.vector_store %arg13[%c0_40, %c0_41], %57 {strides = array<i32>} : memref<72x3xf32, #tpu.memory_space<vmem>>, vector<72x3xf32>,
    } else {
    }
    %c0_i32_2 = arith.constant 0 : i32
    %5 = arith.cmpi eq, %arg0, %c0_i32_2 : i32
    %6 = arith.extui %5 : i1 to i32
    %c0_i32_3 = arith.constant 0 : i32
    %7 = arith.cmpi ne, %6, %c0_i32_3 : i32
    scf.if %7 {
      %cst_36 = arith.constant 0.000000e+00 : f32
      %55 = vector.broadcast %cst_36 : f32 to vector<4x128xf32>
      %56 = arith.index_cast %arg1 : i32 to index
      %c0_37 = arith.constant 0 : index
      %c0_38 = arith.constant 0 : index
      %57 = vector.load %arg14[%56, %c0_37, %c0_38] : memref<1x4x128xf32, #tpu.memory_space<vmem>>, vector<1x4x128xf32>
      %58 = vector.shape_cast %57 : vector<1x4x128xf32> to vector<4x128xf32>
      %59 = vector.shape_cast %55 : vector<4x128xf32> to vector<1x4x128xf32>
      tpu.vector_store %arg14[%56, %c0_37, %c0_38], %59 {strides = array<i32>} : memref<1x4x128xf32, #tpu.memory_space<vmem>>, vector<1x4x128xf32>,
    } else {
    }
    %c0 = arith.constant 0 : index
    %c0_4 = arith.constant 0 : index
    %8 = vector.load %arg7[%c0, %c0_4] : memref<16x8xbf16, #tpu.memory_space<vmem>>, vector<16x8xbf16>
    %c0_5 = arith.constant 0 : index
    %c0_6 = arith.constant 0 : index
    %9 = vector.load %arg2[%c0_5, %c0_6] : memref<8x128xbf16, #tpu.memory_space<vmem>>, vector<8x128xbf16>
    %cst = arith.constant dense<0.000000e+00> : vector<16x128xf32>
    %10 = tpu.matmul %8, %9, %cst {dimension_numbers = #tpu.dot_dimension_numbers<[1], [0], [0], [1], [0, 0, 1, 1], [], []>} : vector<16x8xbf16>, vector<8x128xbf16>, vector<16x128xf32> -> vector<16x128xf32>
    %c0_7 = arith.constant 0 : index
    %c0_8 = arith.constant 0 : index
    %11 = vector.load %arg8[%c0_7, %c0_8] : memref<16x8xbf16, #tpu.memory_space<vmem>>, vector<16x8xbf16>
    %c0_9 = arith.constant 0 : index
    %c0_10 = arith.constant 0 : index
    %12 = vector.load %arg3[%c0_9, %c0_10] : memref<8x128xbf16, #tpu.memory_space<vmem>>, vector<8x128xbf16>
    %cst_11 = arith.constant dense<0.000000e+00> : vector<16x128xf32>
    %13 = tpu.matmul %11, %12, %cst_11 {dimension_numbers = #tpu.dot_dimension_numbers<[1], [0], [0], [1], [0, 0, 1, 1], [], []>} : vector<16x8xbf16>, vector<8x128xbf16>, vector<16x128xf32> -> vector<16x128xf32>
    %14 = tpu.concatenate %10, %13 in 0 : vector<16x128xf32>, vector<16x128xf32> -> vector<32x128xf32>
    %c0_i32_12 = arith.constant 0 : i32
    %15 = arith.cmpi sgt, %arg0, %c0_i32_12 : i32
    %16 = arith.extui %15 : i1 to i32
    %c0_i32_13 = arith.constant 0 : i32
    %17 = arith.cmpi ne, %16, %c0_i32_13 : i32
    scf.if %17 {
      %c0_36 = arith.constant 0 : index
      %c0_37 = arith.constant 0 : index
      %55 = vector.load %arg16[%c0_36, %c0_37] : memref<32x3xf32, #tpu.memory_space<vmem>>, vector<32x3xf32>
      %56 = vector.extract_strided_slice %55 {offsets = [0, 0], sizes = [16, 3], strides = [1, 1]} : vector<32x3xf32> to vector<16x3xf32>
      %57 = arith.truncf %56 : vector<16x3xf32> to vector<16x3xbf16>
      %c0_38 = arith.constant 0 : index
      %c0_39 = arith.constant 0 : index
      %58 = vector.load %arg6[%c0_38, %c0_39] : memref<3x128xbf16, #tpu.memory_space<vmem>>, vector<3x128xbf16>
      %cst_40 = arith.constant dense<0.000000e+00> : vector<16x128xf32>
      %59 = tpu.matmul %57, %58, %cst_40 {dimension_numbers = #tpu.dot_dimension_numbers<[1], [0], [0], [1], [0, 0, 1, 1], [], []>} : vector<16x3xbf16>, vector<3x128xbf16>, vector<16x128xf32> -> vector<16x128xf32>
      %60 = arith.mulf %10, %59 : vector<16x128xf32>
      %61 = arith.truncf %60 : vector<16x128xf32> to vector<16x128xbf16>
      %c0_41 = arith.constant 0 : index
      %c0_42 = arith.constant 0 : index
      %62 = vector.load %arg10[%c0_41, %c0_42] : memref<4x16xbf16, #tpu.memory_space<vmem>>, vector<4x16xbf16>
      %cst_43 = arith.constant dense<0.000000e+00> : vector<4x128xf32>
      %63 = tpu.matmul %62, %61, %cst_43 {dimension_numbers = #tpu.dot_dimension_numbers<[1], [0], [0], [1], [0, 0, 1, 1], [], []>} : vector<4x16xbf16>, vector<16x128xbf16>, vector<4x128xf32> -> vector<4x128xf32>
      %64 = arith.index_cast %arg1 : i32 to index
      %c0_44 = arith.constant 0 : index
      %c0_45 = arith.constant 0 : index
      %65 = vector.load %arg14[%64, %c0_44, %c0_45] : memref<1x4x128xf32, #tpu.memory_space<vmem>>, vector<1x4x128xf32>
      %66 = vector.shape_cast %65 : vector<1x4x128xf32> to vector<4x128xf32>
      %67 = arith.addf %66, %63 : vector<4x128xf32>
      %68 = arith.index_cast %arg1 : i32 to index
      %c0_46 = arith.constant 0 : index
      %c0_47 = arith.constant 0 : index
      %69 = vector.load %arg14[%68, %c0_46, %c0_47] : memref<1x4x128xf32, #tpu.memory_space<vmem>>, vector<1x4x128xf32>
      %70 = vector.shape_cast %69 : vector<1x4x128xf32> to vector<4x128xf32>
      %71 = vector.shape_cast %67 : vector<4x128xf32> to vector<1x4x128xf32>
      tpu.vector_store %arg14[%68, %c0_46, %c0_47], %71 {strides = array<i32>} : memref<1x4x128xf32, #tpu.memory_space<vmem>>, vector<1x4x128xf32>,
    } else {
    }
    %18 = arith.index_cast %arg1 : i32 to index
    %c0_14 = arith.constant 0 : index
    %c0_15 = arith.constant 0 : index
    %19 = vector.load %arg14[%18, %c0_14, %c0_15] : memref<1x4x128xf32, #tpu.memory_space<vmem>>, vector<1x4x128xf32>
    %20 = vector.shape_cast %19 : vector<1x4x128xf32> to vector<4x128xf32>
    %cst_16 = arith.constant dense<0xFF800000> : vector<128xf32>
    %21 = vector.multi_reduction <maximumf>, %20, %cst_16 [0] : vector<4x128xf32> to vector<128xf32>
    %22 = vector.shape_cast %21 : vector<128xf32> to vector<1x128xf32>
    %23 = vector.broadcast %22 : vector<1x128xf32> to vector<4x128xf32>
    %24 = arith.subf %20, %23 : vector<4x128xf32>
    %25 = math.exp %24 : vector<4x128xf32>
    %cst_17 = arith.constant dense<0.000000e+00> : vector<128xf32>
    %26 = vector.multi_reduction <add>, %25, %cst_17 [0] : vector<4x128xf32> to vector<128xf32>
    %27 = vector.shape_cast %26 : vector<128xf32> to vector<1x128xf32>
    %28 = tpu.reciprocal %27 {approx = true} : vector<1x128xf32> -> vector<1x128xf32>
    %29 = vector.broadcast %28 : vector<1x128xf32> to vector<4x128xf32>
    %30 = arith.mulf %25, %29 : vector<4x128xf32>
    %c0_18 = arith.constant 0 : index
    %c0_19 = arith.constant 0 : index
    %31 = vector.load %arg9[%c0_18, %c0_19] : memref<32x4xbf16, #tpu.memory_space<vmem>>, vector<32x4xbf16>
    %32 = arith.truncf %30 : vector<4x128xf32> to vector<4x128xbf16>
    %cst_20 = arith.constant dense<0.000000e+00> : vector<32x128xf32>
    %33 = tpu.matmul %31, %32, %cst_20 {dimension_numbers = #tpu.dot_dimension_numbers<[1], [0], [0], [1], [0, 0, 1, 1], [], []>} : vector<32x4xbf16>, vector<4x128xbf16>, vector<32x128xf32> -> vector<32x128xf32>
    %34 = arith.mulf %33, %14 : vector<32x128xf32>
    %35 = arith.truncf %34 : vector<32x128xf32> to vector<32x128xbf16>
    %c0_21 = arith.constant 0 : index
    %c0_22 = arith.constant 0 : index
    %36 = vector.load %arg5[%c0_21, %c0_22] : memref<128x3xbf16, #tpu.memory_space<vmem>>, vector<128x3xbf16>
    %cst_23 = arith.constant dense<0.000000e+00> : vector<32x3xf32>
    %37 = tpu.matmul %35, %36, %cst_23 {dimension_numbers = #tpu.dot_dimension_numbers<[1], [0], [0], [1], [0, 0, 1, 1], [], []>} : vector<32x128xbf16>, vector<128x3xbf16>, vector<32x3xf32> -> vector<32x3xf32>
    %c0_i32_24 = arith.constant 0 : i32
    %38 = arith.cmpi eq, %arg1, %c0_i32_24 : i32
    %39 = arith.extui %38 : i1 to i32
    %c0_i32_25 = arith.constant 0 : i32
    %40 = arith.cmpi ne, %39, %c0_i32_25 : i32
    scf.if %40 {
      %cst_36 = arith.constant 0.000000e+00 : f32
      %55 = vector.broadcast %cst_36 : f32 to vector<32x3xf32>
      %c0_37 = arith.constant 0 : index
      %c0_38 = arith.constant 0 : index
      %56 = vector.load %arg15[%c0_37, %c0_38] : memref<32x3xf32, #tpu.memory_space<vmem>>, vector<32x3xf32>
      tpu.vector_store %arg15[%c0_37, %c0_38], %55 {strides = array<i32>} : memref<32x3xf32, #tpu.memory_space<vmem>>, vector<32x3xf32>,
    } else {
    }
    %c0_26 = arith.constant 0 : index
    %c0_27 = arith.constant 0 : index
    %41 = vector.load %arg15[%c0_26, %c0_27] : memref<32x3xf32, #tpu.memory_space<vmem>>, vector<32x3xf32>
    %42 = arith.addf %41, %37 : vector<32x3xf32>
    %c0_28 = arith.constant 0 : index
    %c0_29 = arith.constant 0 : index
    %43 = vector.load %arg15[%c0_28, %c0_29] : memref<32x3xf32, #tpu.memory_space<vmem>>, vector<32x3xf32>
    tpu.vector_store %arg15[%c0_28, %c0_29], %42 {strides = array<i32>} : memref<32x3xf32, #tpu.memory_space<vmem>>, vector<32x3xf32>,
    %c2_i32 = arith.constant 2 : i32
    %44 = arith.cmpi eq, %arg0, %c2_i32 : i32
    %45 = arith.extui %44 : i1 to i32
    %c0_i32_30 = arith.constant 0 : i32
    %46 = arith.cmpi ne, %45, %c0_i32_30 : i32
    scf.if %46 {
      %c0_36 = arith.constant 0 : index
      %c0_37 = arith.constant 0 : index
      %55 = vector.load %arg4[%c0_36, %c0_37] : memref<18x128xf32, #tpu.memory_space<vmem>>, vector<18x128xf32>
      %56 = vector.extract_strided_slice %30 {offsets = [0, 0], sizes = [1, 128], strides = [1, 1]} : vector<4x128xf32> to vector<1x128xf32>
      %57 = vector.broadcast %56 : vector<1x128xf32> to vector<18x128xf32>
      %58 = arith.mulf %57, %55 : vector<18x128xf32>
      %59 = arith.truncf %58 : vector<18x128xf32> to vector<18x128xbf16>
      %c0_38 = arith.constant 0 : index
      %c0_39 = arith.constant 0 : index
      %60 = vector.load %arg5[%c0_38, %c0_39] : memref<128x3xbf16, #tpu.memory_space<vmem>>, vector<128x3xbf16>
      %cst_40 = arith.constant dense<0.000000e+00> : vector<18x3xf32>
      %61 = tpu.matmul %59, %60, %cst_40 {dimension_numbers = #tpu.dot_dimension_numbers<[1], [0], [0], [1], [0, 0, 1, 1], [], []>} : vector<18x128xbf16>, vector<128x3xbf16>, vector<18x3xf32> -> vector<18x3xf32>
      %62 = vector.extract_strided_slice %30 {offsets = [1, 0], sizes = [1, 128], strides = [1, 1]} : vector<4x128xf32> to vector<1x128xf32>
      %63 = vector.broadcast %62 : vector<1x128xf32> to vector<18x128xf32>
      %64 = arith.mulf %63, %55 : vector<18x128xf32>
      %65 = arith.truncf %64 : vector<18x128xf32> to vector<18x128xbf16>
      %c0_41 = arith.constant 0 : index
      %c0_42 = arith.constant 0 : index
      %66 = vector.load %arg5[%c0_41, %c0_42] : memref<128x3xbf16, #tpu.memory_space<vmem>>, vector<128x3xbf16>
      %cst_43 = arith.constant dense<0.000000e+00> : vector<18x3xf32>
      %67 = tpu.matmul %65, %66, %cst_43 {dimension_numbers = #tpu.dot_dimension_numbers<[1], [0], [0], [1], [0, 0, 1, 1], [], []>} : vector<18x128xbf16>, vector<128x3xbf16>, vector<18x3xf32> -> vector<18x3xf32>
      %68 = vector.extract_strided_slice %30 {offsets = [2, 0], sizes = [1, 128], strides = [1, 1]} : vector<4x128xf32> to vector<1x128xf32>
      %69 = vector.broadcast %68 : vector<1x128xf32> to vector<18x128xf32>
      %70 = arith.mulf %69, %55 : vector<18x128xf32>
      %71 = arith.truncf %70 : vector<18x128xf32> to vector<18x128xbf16>
      %c0_44 = arith.constant 0 : index
      %c0_45 = arith.constant 0 : index
      %72 = vector.load %arg5[%c0_44, %c0_45] : memref<128x3xbf16, #tpu.memory_space<vmem>>, vector<128x3xbf16>
      %cst_46 = arith.constant dense<0.000000e+00> : vector<18x3xf32>
      %73 = tpu.matmul %71, %72, %cst_46 {dimension_numbers = #tpu.dot_dimension_numbers<[1], [0], [0], [1], [0, 0, 1, 1], [], []>} : vector<18x128xbf16>, vector<128x3xbf16>, vector<18x3xf32> -> vector<18x3xf32>
      %74 = vector.extract_strided_slice %30 {offsets = [3, 0], sizes = [1, 128], strides = [1, 1]} : vector<4x128xf32> to vector<1x128xf32>
      %75 = vector.broadcast %74 : vector<1x128xf32> to vector<18x128xf32>
      %76 = arith.mulf %75, %55 : vector<18x128xf32>
      %77 = arith.truncf %76 : vector<18x128xf32> to vector<18x128xbf16>
      %c0_47 = arith.constant 0 : index
      %c0_48 = arith.constant 0 : index
      %78 = vector.load %arg5[%c0_47, %c0_48] : memref<128x3xbf16, #tpu.memory_space<vmem>>, vector<128x3xbf16>
      %cst_49 = arith.constant dense<0.000000e+00> : vector<18x3xf32>
      %79 = tpu.matmul %77, %78, %cst_49 {dimension_numbers = #tpu.dot_dimension_numbers<[1], [0], [0], [1], [0, 0, 1, 1], [], []>} : vector<18x128xbf16>, vector<128x3xbf16>, vector<18x3xf32> -> vector<18x3xf32>
      %c0_50 = arith.constant 0 : index
      %c0_51 = arith.constant 0 : index
      %80 = vector.load %arg13[%c0_50, %c0_51] : memref<72x3xf32, #tpu.memory_space<vmem>>, vector<72x3xf32>
      %81 = tpu.concatenate %61, %67, %73, %79 in 0 : vector<18x3xf32>, vector<18x3xf32>, vector<18x3xf32>, vector<18x3xf32> -> vector<72x3xf32>
      %82 = arith.addf %80, %81 : vector<72x3xf32>
      %c0_52 = arith.constant 0 : index
      %c0_53 = arith.constant 0 : index
      %83 = vector.load %arg13[%c0_52, %c0_53] : memref<72x3xf32, #tpu.memory_space<vmem>>, vector<72x3xf32>
      tpu.vector_store %arg13[%c0_52, %c0_53], %82 {strides = array<i32>} : memref<72x3xf32, #tpu.memory_space<vmem>>, vector<72x3xf32>,
    } else {
    }
    %c0_i32_31 = arith.constant 0 : i32
    %47 = arith.cmpi eq, %arg1, %c0_i32_31 : i32
    %48 = arith.extui %47 : i1 to i32
    %c0_i32_32 = arith.constant 0 : i32
    %49 = arith.cmpi ne, %48, %c0_i32_32 : i32
    scf.if %49 {
      %c0_36 = arith.constant 0 : index
      %c0_37 = arith.constant 0 : index
      %55 = vector.load %arg15[%c0_36, %c0_37] : memref<32x3xf32, #tpu.memory_space<vmem>>, vector<32x3xf32>
      %c0_38 = arith.constant 0 : index
      %c0_39 = arith.constant 0 : index
      %56 = vector.load %arg11[%c0_38, %c0_39] : memref<32x1xf32, #tpu.memory_space<vmem>>, vector<32x1xf32>
      %57 = vector.broadcast %56 : vector<32x1xf32> to vector<32x3xf32>
      %58 = arith.addf %55, %57 : vector<32x3xf32>
      %c0_40 = arith.constant 0 : index
      %c0_41 = arith.constant 0 : index
      %59 = vector.load %arg10[%c0_40, %c0_41] : memref<4x16xbf16, #tpu.memory_space<vmem>>, vector<4x16xbf16>
      %60 = arith.extf %59 : vector<4x16xbf16> to vector<4x16xf32>
      %61 = tpu.concatenate %60, %60 in 1 : vector<4x16xf32>, vector<4x16xf32> -> vector<4x32xf32>
      %62 = arith.mulf %58, %58 : vector<32x3xf32>
      %cst_42 = arith.constant dense<0.000000e+00> : vector<4x3xf32>
      %63 = tpu.matmul %61, %62, %cst_42 {dimension_numbers = #tpu.dot_dimension_numbers<[1], [0], [0], [1], [0, 0, 1, 1], [], []>} : vector<4x32xf32>, vector<32x3xf32>, vector<4x3xf32> -> vector<4x3xf32>
      %cst_43 = arith.constant 1.000000e+00 : f32
      %64 = vector.broadcast %cst_43 : f32 to vector<4x3xf32>
      %65 = arith.addf %64, %63 : vector<4x3xf32>
      %66 = math.sqrt %63 : vector<4x3xf32>
      %cst_44 = arith.constant 9.99999993E-9 : f32
      %67 = vector.broadcast %cst_44 : f32 to vector<4x3xf32>
      %68 = arith.addf %66, %67 : vector<4x3xf32>
      %69 = arith.mulf %65, %68 : vector<4x3xf32>
      %70 = tpu.reciprocal %69 {approx = true} : vector<4x3xf32> -> vector<4x3xf32>
      %71 = arith.mulf %63, %70 : vector<4x3xf32>
      %c0_45 = arith.constant 0 : index
      %c0_46 = arith.constant 0 : index
      %72 = vector.load %arg9[%c0_45, %c0_46] : memref<32x4xbf16, #tpu.memory_space<vmem>>, vector<32x4xbf16>
      %73 = arith.extf %72 : vector<32x4xbf16> to vector<32x4xf32>
      %cst_47 = arith.constant dense<0.000000e+00> : vector<32x3xf32>
      %74 = tpu.matmul %73, %71, %cst_47 {dimension_numbers = #tpu.dot_dimension_numbers<[1], [0], [0], [1], [0, 0, 1, 1], [], []>} : vector<32x4xf32>, vector<4x3xf32>, vector<32x3xf32> -> vector<32x3xf32>
      %75 = arith.mulf %74, %58 : vector<32x3xf32>
      %c0_48 = arith.constant 0 : index
      %c0_49 = arith.constant 0 : index
      %76 = vector.load %arg16[%c0_48, %c0_49] : memref<32x3xf32, #tpu.memory_space<vmem>>, vector<32x3xf32>
      tpu.vector_store %arg16[%c0_48, %c0_49], %75 {strides = array<i32>} : memref<32x3xf32, #tpu.memory_space<vmem>>, vector<32x3xf32>,
    } else {
    }
    %c0_i32_33 = arith.constant 0 : i32
    %50 = arith.cmpi eq, %arg1, %c0_i32_33 : i32
    %c2_i32_34 = arith.constant 2 : i32
    %51 = arith.cmpi eq, %arg0, %c2_i32_34 : i32
    %52 = arith.andi %50, %51 : i1
    %53 = arith.extui %52 : i1 to i32
    %c0_i32_35 = arith.constant 0 : i32
    %54 = arith.cmpi ne, %53, %c0_i32_35 : i32
    scf.if %54 {
      %c0_36 = arith.constant 0 : index
      %c0_37 = arith.constant 0 : index
      %55 = vector.load %arg16[%c0_36, %c0_37] : memref<32x3xf32, #tpu.memory_space<vmem>>, vector<32x3xf32>
      %c0_38 = arith.constant 0 : index
      %c0_39 = arith.constant 0 : index
      %56 = vector.load %arg12[%c0_38, %c0_39] : memref<32x3xf32, #tpu.memory_space<vmem>>, vector<32x3xf32>
      tpu.vector_store %arg12[%c0_38, %c0_39], %55 {strides = array<i32>} : memref<32x3xf32, #tpu.memory_space<vmem>>, vector<32x3xf32>,
    } else {
    }
    return
  }
  func.func @transform_0(%arg0: i32, %arg1: i32) -> (i32, i32) {
    %c0_i32 = arith.constant 0 : i32
    %c0_i32_0 = arith.constant 0 : i32
    return %c0_i32, %arg1 : i32, i32
  }
  func.func @transform_1(%arg0: i32, %arg1: i32) -> (i32, i32) {
    %c0_i32 = arith.constant 0 : i32
    %c0_i32_0 = arith.constant 0 : i32
    return %c0_i32, %arg1 : i32, i32
  }
  func.func @transform_2(%arg0: i32, %arg1: i32) -> (i32, i32) {
    %c0_i32 = arith.constant 0 : i32
    %c0_i32_0 = arith.constant 0 : i32
    return %c0_i32, %arg1 : i32, i32
  }
  func.func @transform_3(%arg0: i32, %arg1: i32) -> (i32, i32) {
    %c0_i32 = arith.constant 0 : i32
    %c0_i32_0 = arith.constant 0 : i32
    return %arg1, %c0_i32 : i32, i32
  }
  func.func @transform_4(%arg0: i32, %arg1: i32) -> (i32, i32) {
    %c0_i32 = arith.constant 0 : i32
    %c0_i32_0 = arith.constant 0 : i32
    return %c0_i32, %arg1 : i32, i32
  }
  func.func @transform_5(%arg0: i32, %arg1: i32) -> (i32, i32) {
    %c0_i32 = arith.constant 0 : i32
    %c0_i32_0 = arith.constant 0 : i32
    %c0_i32_1 = arith.constant 0 : i32
    return %c0_i32, %c0_i32_0 : i32, i32
  }
  func.func @transform_6(%arg0: i32, %arg1: i32) -> (i32, i32) {
    %c0_i32 = arith.constant 0 : i32
    %c0_i32_0 = arith.constant 0 : i32
    %c0_i32_1 = arith.constant 0 : i32
    return %c0_i32, %c0_i32_0 : i32, i32
  }
  func.func @transform_7(%arg0: i32, %arg1: i32) -> (i32, i32) {
    %c0_i32 = arith.constant 0 : i32
    %c0_i32_0 = arith.constant 0 : i32
    %c0_i32_1 = arith.constant 0 : i32
    return %c0_i32, %c0_i32_0 : i32, i32
  }
  func.func @transform_8(%arg0: i32, %arg1: i32) -> (i32, i32) {
    %c0_i32 = arith.constant 0 : i32
    %c0_i32_0 = arith.constant 0 : i32
    %c0_i32_1 = arith.constant 0 : i32
    return %c0_i32, %c0_i32_0 : i32, i32
  }
  func.func @transform_9(%arg0: i32, %arg1: i32) -> (i32, i32) {
    %c0_i32 = arith.constant 0 : i32
    %c0_i32_0 = arith.constant 0 : i32
    %c0_i32_1 = arith.constant 0 : i32
    return %c0_i32, %c0_i32_0 : i32, i32
  }
  func.func @transform_10(%arg0: i32, %arg1: i32) -> (i32, i32) {
    %c0_i32 = arith.constant 0 : i32
    %c0_i32_0 = arith.constant 0 : i32
    %c0_i32_1 = arith.constant 0 : i32
    return %c0_i32, %c0_i32_0 : i32, i32
  }
  func.func @transform_11(%arg0: i32, %arg1: i32) -> (i32, i32) {
    %c0_i32 = arith.constant 0 : i32
    %c0_i32_0 = arith.constant 0 : i32
    %c0_i32_1 = arith.constant 0 : i32
    return %c0_i32, %c0_i32_0 : i32, i32
  }
}

</mosaic_0001>

<bundles_post_ra>
// kernel: tpu_custom_call.1
= control target key start
LH: loop header
LB: loop body
LE: loop exit
PB: predicated region body
PF: predicated region fallthrough
CT: control target
= control target key end

     0   :  { %s1556_s17 = smov 0   ;;  %s1558_s18 = smov 0   ;;  %s1869_s0 = inlined_call_operand.vmem [shape: bf16[8,128], index: 0, kind: input, shape index: {}]   ;;  %s1870_s1 = inlined_call_operand.vmem [shape: bf16[8,128], index: 1, kind: input, shape index: {}]   ;;  %s1871_s2 = inlined_call_operand.vmem [shape: f32[18,128], index: 2, kind: input, shape index: {}]   ;;  %s1872_s3 = inlined_call_operand.vmem [shape: bf16[128,3], index: 3, kind: input, shape index: {}]   ;;  %s1873_s4 = inlined_call_operand.vmem [shape: bf16[3,128], index: 4, kind: input, shape index: {}]   ;;  %s1874_s5 = inlined_call_operand.vmem [shape: bf16[16,8], index: 5, kind: input, shape index: {}]   ;;  %s1875_s6 = inlined_call_operand.vmem [shape: bf16[16,8], index: 6, kind: input, shape index: {}]   ;;  %s1876_s7 = inlined_call_operand.vmem [shape: bf16[32,4], index: 7, kind: input, shape index: {}]   ;;  %s1877_s8 = inlined_call_operand.vmem [shape: bf16[4,16], index: 8, kind: input, shape index: {}]   ;;  %s1878_s9 = inlined_call_operand.vmem [shape: f32[32,1], index: 9, kind: input, shape index: {}]   ;;  %s1879_s10 = inlined_call_operand.vmem [shape: f32[32,3], index: 10, kind: output, shape index: {0}]   ;;  %s1880_s11 = inlined_call_operand.vmem [shape: f32[72,3], index: 11, kind: output, shape index: {1}]  }
   0x1   :  { %s1560_s19 = smov 0  }
   0x2 LB: > { %s34_s20 = sadd.s32 1, %s1484_s18  ;;  %p1285_p0 = scmp.ge.s32.totalorder %s1488_s19, 1  ;;  %s1488_s19 = sphi %s1560_s19, %s22_s19   ;;  %s1484_s18 = sphi %s1558_s18, %s1882_s18   ;;  %s1480_s17 = sphi %s1556_s17, %s1881_s17  }
   0x3   : > { %p36_p1 = scmp.ge.s32.totalorder %s34_s20, 3  ;;  %p379_p2 = scmp.lt.s32.totalorder %s1488_s19, 4 }
   0x5   : > { %s1884_s20 = smov (%p36_p1, %s34_s20), 0  ;;  %p380_p3 = pnand %p1285_p0, %p379_p2 }
   0x6   : > { %p453_p4 = scmp.eq.s32.totalorder (!%p380_p3), %s1480_s17, 0 }
   0x7   : > { %383 = sbr.rel (%p380_p3) target bundleno = 1445 (0x5a5), region = 60 }
   0xc   : > { %458 = sbr.rel (!%p453_p4) target bundleno = 26 (0x1a), region = 64  ;;  %vm459_vm0 = vcmask (%p453_p4), 23552   ;;  %v1490_v0 = vmov (%p453_p4), 0.0  }
   0xd   : > { %460 = vst.msk [vmem:[%s1879_s10] sm:$0xff] (%p453_p4), %vm459_vm0, %v1490_v0 }
   0xe   : > { %461 = vst.msk [vmem:[%s1879_s10 + $0x8] sm:$0xff] (%p453_p4), %vm459_vm0, %v1490_v0 }
   0xf   : > { %462 = vst.msk [vmem:[%s1879_s10 + $0x10] sm:$0xff] (%p453_p4), %vm459_vm0, %v1490_v0 }
  0x10   : > { %463 = vst.msk [vmem:[%s1879_s10 + $0x18] sm:$0xff] (%p453_p4), %vm459_vm0, %v1490_v0 }
  0x11   : > { %464 = vst.msk [vmem:[%s1880_s11] sm:$0xff] %vm459_vm0, %v1490_v0 }
  0x12   : > { %465 = vst.msk [vmem:[%s1880_s11 + $0x8] sm:$0xff] %vm459_vm0, %v1490_v0 }
  0x13   : > { %466 = vst.msk [vmem:[%s1880_s11 + $0x10] sm:$0xff] %vm459_vm0, %v1490_v0 }
  0x14   : > { %467 = vst.msk [vmem:[%s1880_s11 + $0x18] sm:$0xff] %vm459_vm0, %v1490_v0 }
  0x15   : > { %468 = vst.msk [vmem:[%s1880_s11 + $0x20] sm:$0xff] %vm459_vm0, %v1490_v0 }
  0x16   : > { %469 = vst.msk [vmem:[%s1880_s11 + $0x28] sm:$0xff] %vm459_vm0, %v1490_v0 }
  0x17   : > { %470 = vst.msk [vmem:[%s1880_s11 + $0x30] sm:$0xff] %vm459_vm0, %v1490_v0 }
  0x18   : > { %471 = vst.msk [vmem:[%s1880_s11 + $0x38] sm:$0xff] %vm459_vm0, %v1490_v0 }
  0x19   : > { %472 = vst.msk [vmem:[%s1880_s11 + $0x40] sm:$0xff] %vm459_vm0, %v1490_v0 }
  0x1a PF: > { %p1287_p5 = scmp.ne.s32.totalorder %s1480_s17, 0 }
  0x1c   : > { %475 = sbr.rel (%p1287_p5) target bundleno = 35 (0x23), region = 68 }
  0x21   : > { %v1491_v1 = vmov 0.0  }
  0x22   : > { %478 = vst [vmem:[#allocation2] sm:$0xf] %v1491_v1 }
  0x23 PF: > { %v481_v2 = vld [vmem:[%s1869_s0] sm:$0xf]  ;;  %vm491_vm1 = vcmask 1043456   ;;  %vm487_vm2 = vcmask 64512   ;;  %p1298_p6 = scmp.le.s32.totalorder %s1480_s17, 0 }
  0x24   : > { %v511_v3 = vld [vmem:[%s1870_s1] sm:$0xf]  ;;  %v493_v4 = vsel %vm491_vm1, %v481_v2, 0 }
  0x25   : > { %v521_v5 = vsel %vm491_vm1, %v511_v3, 0  ;;  %v1386_v6 = vld [vmem:[%s1874_s5] sm:$0xff]  ;;  %502 = vmatpush.bf16.msra.mxu0 %v493_v4 }
  0x26   : > { %v1387_v7 = vld [vmem:[%s1875_s6] sm:$0xff]  ;;  %530 = vmatpush.bf16.msra.mxu1 %v521_v5 }
  0x28   : > { %1292 = vmatmul.msk.bf16.vlgmr.msra.gmra.mxu0 %vm487_vm2, %v1386_v6 }
  0x29   : > { %1297 = vmatmul.msk.bf16.vlgmr.msra.gmra.mxu1 %vm487_vm2, %v1387_v7 }
  0xa5   : > { %v1631_v8 = vpop.f32.mrf.mxu0 }
  0xa6   : > { %v1633_v9 = vpop.f32.mrf.mxu1 }
  0xaa   : > { %540 = sbr.rel (%p1298_p6) target bundleno = 458 (0x1ca), region = 72 }
  0xad   : > { %v1635_v10 = vpop.f32.mrf.mxu0 }
  0xae   : > { %v1637_v11 = vpop.f32.mrf.mxu1 }
  0xaf   : > { %v544_v12 = vld [vmem:[%s1873_s4] sm:$0x3]  ;;  %vm549_vm3 = vcmask 1040384   ;;  %vm550_vm4 = vcmask 1041408   ;;  %v1492_v13 = vmov 65535   ;;  %v541_v15 = vld [vmem:[#allocation4] sm:$0xff] }
  0xb0   : > { %v551_v14 = vsel %vm549_vm3, 4294967295, %v1492_v13  ;;  %v542_v16 = vld [vmem:[#allocation4 + $0x8] sm:$0xff]  ;;  %vm545_vm5 = vcmask 23552   ;;  %v573_v25 = vld [vmem:[%s1877_s8] sm:$0x3]  ;;  %vm574_vm6 = vcmask 130048  }
  0xb1   : > { %v552_v17 = vsel %vm550_vm4, %v551_v14, 0  ;;  %v543_v19 = vpack.c.bf16 %v542_v16, %v541_v15  ;;  %v593_v26 = vld [vmem:[#allocation2] sm:$0xf] }
  0xb2   : > { %v554_v18 = vand.u32 %v552_v17, %v544_v12 }
  0xb4   : > { %563 = vmatpush.bf16.msra.mxu0 %v554_v18 }
  0xb7   : > { %1299 = vmatmul.msk.bf16.vlgmr.msra.gmra.mxu0 %vm545_vm5, %v543_v19 }
 0x134   : > { %v565_v20 = vpop.f32.mrf.mxu0 }
 0x135   : > { %v570_v22 = vmul.f32 %v565_v20, %v1631_v8 }
 0x13c   : > { %v567_v21 = vpop.f32.mrf.mxu0 }
 0x13d   : > { %v571_v23 = vmul.f32 %v567_v21, %v1635_v10 }
 0x13f   : > { %v572_v24 = vpack.c.bf16 %v571_v23, %v570_v22 }
 0x141   : > { %585 = vmatpush.bf16.msra.mxu1 %v572_v24 }
 0x144   : > { %1300 = vmatmul.msk.bf16.vlgmr.msra.gmra.mxu1 %vm574_vm6, %v573_v25 }
 0x1c1   : > { %v587_v27 = vpop.f32.mrf.mxu1 }
 0x1c2   : > { %v594_v28 = vadd.f32 %v593_v26, %v587_v27 }
 0x1c4   : > { %595 = vst [vmem:[#allocation2] sm:$0xf] %v594_v28 }
 0x1c9   : > { %v589_v29 = vpop.f32.mrf.mxu1 }
 0x1ca PF: > { %v1397_v48 = vld [vmem:[%s1872_s3 + $0x38] sm:$0xff]  ;;  %v1396_v49 = vld [vmem:[%s1872_s3 + $0x30] sm:$0xff]  ;;  %v1395_v50 = vld [vmem:[%s1872_s3 + $0x28] sm:$0xff]  ;;  %vm640_vm7 = vcmask 1041408   ;;  %vm633_vm8 = vcmask 31744   ;;  %p773_p7 = scmp.eq.s32.totalorder %s1480_s17, 2 }
 0x1cb   : > { %v598_v30 = vld [vmem:[#allocation2] sm:$0xf]  ;;  %733 = vmatpush.bf16.msra.mxu1 %v1397_v48  ;;  %1416 = vmatpush.bf16.msra.mxu2 %v1397_v48  ;;  %v1394_v54 = vld [vmem:[%s1872_s3 + $0x20] sm:$0xff]  ;;  %v1393_v57 = vld [vmem:[%s1872_s3 + $0x18] sm:$0xff]  ;;  %vm755_vm9 = vcmask 23552   ;;  %v1493_v12 = vmov 0.0  }
 0x1cc   : > { %v599_v31 = vsel %vm491_vm1, %v598_v30, -inf  ;;  %v1388_v56 = vld [vmem:[%s1876_s7] sm:$0xff]  ;;  %v1389_v58 = vld [vmem:[%s1876_s7 + $0x8] sm:$0xff]  ;;  %v1392_v59 = vld [vmem:[%s1872_s3 + $0x10] sm:$0xff]  ;;  %756 = vst.msk [vmem:[#allocation3] sm:$0xff] %vm755_vm9, %v1493_v12  ;;  %p1343_p8 = scmp.ne.s32.totalorder %s1480_s17, 2 }
 0x1cd   : > { %v600_v32 = vrot.slane %v599_v31, 4  ;;  %v1391_v60 = vld [vmem:[%s1872_s3 + $0x8] sm:$0xff]  ;;  %v1390_v61 = vld [vmem:[%s1872_s3] sm:$0xff]  ;;  %757 = vst.msk [vmem:[#allocation3 + $0x8] sm:$0xff] %vm755_vm9, %v1493_v12 }
 0x1ce   : > { %758 = vst.msk [vmem:[#allocation3 + $0x10] sm:$0xff] %vm755_vm9, %v1493_v12 }
 0x1cf   : > { %v601_v33 = vmax.f32 %v599_v31, %v600_v32  ;;  %734 = vmatpush.bf16.msra.mxu1 %v1396_v49  ;;  %1417 = vmatpush.bf16.msra.mxu2 %v1396_v49  ;;  %759 = vst.msk [vmem:[#allocation3 + $0x18] sm:$0xff] %vm755_vm9, %v1493_v12 }
 0x1d1   : > { %v602_v34 = vrot.slane %v601_v33, 2 }
 0x1d3   : > { %v603_v35 = vmax.f32 %v601_v33, %v602_v34  ;;  %735 = vmatpush.bf16.msra.mxu1 %v1395_v50  ;;  %1418 = vmatpush.bf16.msra.mxu2 %v1395_v50 }
 0x1d5   : > { %v604_v36 = vrot.slane %v603_v35, 1  ;;  %v762_v15 = vld [vmem:[#allocation3 + $0x10] sm:$0xff] }
 0x1d6   : > { %v763_v18 = vld [vmem:[#allocation3 + $0x18] sm:$0xff] }
 0x1d7   : > { %v605_v37 = vmax.f32 %v603_v35, %v604_v36  ;;  %736 = vmatpush.bf16.msra.mxu1 %v1394_v54  ;;  %1419 = vmatpush.bf16.msra.mxu2 %v1394_v54 }
 0x1d9   : > { %v606_v38 = vsub.f32 %v598_v30, %v605_v37 }
 0x1db   : > { %v607_v39 = vmul.f32 1.442695, %v606_v38  ;;  %737 = vmatpush.bf16.msra.mxu1 %v1393_v57  ;;  %1420 = vmatpush.bf16.msra.mxu2 %v1393_v57 }
 0x1dd   : > { %1456 = vpow2.f32 %v607_v39 }
 0x1df   : > { %738 = vmatpush.bf16.msra.mxu1 %v1392_v59  ;;  %1421 = vmatpush.bf16.msra.mxu2 %v1392_v59 }
 0x1e3   : > { %v1457_v40 = vpop.eup %1456  ;;  %739 = vmatpush.bf16.msra.mxu1 %v1391_v60  ;;  %1422 = vmatpush.bf16.msra.mxu2 %v1391_v60 }
 0x1e4   : > { %v609_v41 = vsel %vm491_vm1, %v1457_v40, 0.0 }
 0x1e5   : > { %v610_v42 = vrot.slane %v609_v41, 4 }
 0x1e7   : > { %v611_v43 = vadd.f32 %v610_v42, %v609_v41  ;;  %740 = vmatpush.bf16.msra.mxu1 %v1390_v61  ;;  %1423 = vmatpush.bf16.msra.mxu2 %v1390_v61 }
 0x1e9   : > { %v612_v44 = vrot.slane %v611_v43, 2 }
 0x1eb   : > { %v613_v45 = vadd.f32 %v612_v44, %v611_v43 }
 0x1ed   : > { %v614_v46 = vrot.slane %v613_v45, 1 }
 0x1ef   : > { %v615_v47 = vadd.f32 %v614_v46, %v613_v45 }
 0x1f1   : > { %1458 = vrcp.f32 %v615_v47 }
 0x1f7   : > { %v1459_v51 = vpop.eup %1458 }
 0x1f8   : > { %v1659_v52 = vmul.f32 %v1459_v51, %v1457_v40 }
 0x1fa   : > { %v622_v53 = vpack.c.bf16 %v1659_v52, %v1659_v52 }
 0x1fc   : > { %v642_v55 = vsel %vm640_vm7, %v622_v53, 0 }
 0x1fd   : > { %651 = vmatpush.bf16.msra.mxu0 %v642_v55 }
 0x200   : > { %1309 = vmatmul.msk.bf16.vlgmr.msra.gmra.mxu0 %vm633_vm8, %v1388_v56 }
 0x210   : > { %1310 = vmatmul.msk.bf16.gmra.mxu0 %vm633_vm8, %v1389_v58 }
 0x27d   : > { %v653_v62 = vpop.f32.mrf.mxu0 }
 0x27e   : > { %v663_v0 = vmul.f32 %v653_v62, %v1631_v8  ;;  %v760_v8 = vld [vmem:[#allocation3] sm:$0xff] }
 0x285   : > { %v655_v63 = vpop.f32.mrf.mxu0 }
 0x286   : > { %v664_v1 = vmul.f32 %v655_v63, %v1635_v10 }
 0x288   : > { %v667_v2 = vpack.c.bf16 %v664_v1, %v663_v0 }
 0x28a   : > { %741 = vmatmul.bf16.vlgmr.msra.gmra.mxu1 %v667_v2 }
 0x28d   : > { %v658_v3 = vpop.f32.mrf.mxu0 }
 0x28e   : > { %v665_v5 = vmul.f32 %v658_v3, %v1633_v9  ;;  %v761_v9 = vld [vmem:[#allocation3 + $0x8] sm:$0xff] }
 0x295   : > { %v660_v4 = vpop.f32.mrf.mxu0 }
 0x296   : > { %v666_v6 = vmul.f32 %v660_v4, %v1637_v11 }
 0x298   : > { %v668_v7 = vpack.c.bf16 %v666_v6, %v665_v5 }
 0x29a   : > { %746 = vmatmul.bf16.vlgmr.msra.gmra.mxu2 %v668_v7 }
 0x307   : > { %v742_v10 = vpop.f32.mrf.mxu1 }
 0x308   : > { %v764_v13 = vadd.f32 %v760_v8, %v742_v10 }
 0x30a   : > { %769 = vst.msk [vmem:[#allocation3] sm:$0xff] %vm755_vm9, %v764_v13 }
 0x30f   : > { %v744_v11 = vpop.f32.mrf.mxu1 }
 0x310   : > { %v765_v14 = vadd.f32 %v761_v9, %v744_v11 }
 0x312   : > { %770 = vst.msk [vmem:[#allocation3 + $0x8] sm:$0xff] %vm755_vm9, %v765_v14 }
 0x31d   : > { %v747_v16 = vpop.f32.mrf.mxu2 }
 0x31e   : > { %v766_v17 = vadd.f32 %v762_v15, %v747_v16 }
 0x320   : > { %771 = vst.msk [vmem:[#allocation3 + $0x10] sm:$0xff] %vm755_vm9, %v766_v17 }
 0x324   : > { %776 = sbr.rel (%p1343_p8) target bundleno = 998 (0x3e6), region = 80 }
 0x325   : > { %v749_v19 = vpop.f32.mrf.mxu2 }
 0x326   : > { %v767_v20 = vadd.f32 %v763_v18, %v749_v19 }
 0x328   : > { %772 = vst.msk [vmem:[#allocation3 + $0x18] sm:$0xff] %vm755_vm9, %v767_v20 }
 0x329   : > { %v1405_v21 = vld [vmem:[%s1872_s3 + $0x38] sm:$0xff]  ;;  %v1404_v22 = vld [vmem:[%s1872_s3 + $0x30] sm:$0xff]  ;;  %v1403_v23 = vld [vmem:[%s1872_s3 + $0x28] sm:$0xff]  ;;  %v780_v27 = vperm.slane %v1659_v52, 0  ;;  %v868_v29 = vperm.slane %v1659_v52, 1  ;;  %v892_v30 = vperm.slane %v1659_v52, 2 }
 0x32a   : > { %850 = vmatpush.bf16.msra.mxu0 %v1405_v21  ;;  %874 = vmatpush.bf16.msra.mxu1 %v1405_v21  ;;  %v1402_v24 = vld [vmem:[%s1872_s3 + $0x20] sm:$0xff]  ;;  %v1401_v25 = vld [vmem:[%s1872_s3 + $0x18] sm:$0xff]  ;;  %v1400_v26 = vld [vmem:[%s1872_s3 + $0x10] sm:$0xff]  ;;  %v916_v33 = vperm.slane %v1659_v52, 3  ;;  %vm974_vm10 = vcmask 1045504  }
 0x32b   : > { %898 = vmatpush.bf16.msra.mxu2 %v1405_v21  ;;  %922 = vmatpush.bf16.msra.mxu3 %v1405_v21  ;;  %v777_v28 = vld [vmem:[%s1871_s2] sm:$0xff]  ;;  %v1399_v31 = vld [vmem:[%s1872_s3 + $0x8] sm:$0xff]  ;;  %v779_v47 = vld [vmem:[%s1871_s2 + $0x10] sm:$0x3] }
 0x32c   : > { %v778_v32 = vld [vmem:[%s1871_s2 + $0x8] sm:$0xff]  ;;  %v781_v34 = vmul.f32 %v780_v27, %v777_v28  ;;  %v869_v36 = vmul.f32 %v868_v29, %v777_v28  ;;  %v893_v38 = vmul.f32 %v892_v30, %v777_v28  ;;  %v1398_v39 = vld [vmem:[%s1872_s3] sm:$0xff]  ;;  %v917_v41 = vmul.f32 %v916_v33, %v777_v28  ;;  %v943_v3 = vld [vmem:[%s1880_s11 + $0x18] sm:$0xff] }
 0x32d   : > { %v782_v35 = vmul.f32 %v780_v27, %v778_v32  ;;  %v870_v37 = vmul.f32 %v868_v29, %v778_v32  ;;  %v894_v40 = vmul.f32 %v892_v30, %v778_v32  ;;  %v918_v42 = vmul.f32 %v916_v33, %v778_v32  ;;  %v940_v56 = vld [vmem:[%s1880_s11] sm:$0xff]  ;;  %v941_v60 = vld [vmem:[%s1880_s11 + $0x8] sm:$0xff]  ;;  %v942_v8 = vld [vmem:[%s1880_s11 + $0x10] sm:$0xff] }
 0x32e   : > { %851 = vmatpush.bf16.msra.mxu0 %v1404_v22  ;;  %875 = vmatpush.bf16.msra.mxu1 %v1404_v22  ;;  %v783_v48 = vmul.f32 %v780_v27, %v779_v47  ;;  %v871_v49 = vmul.f32 %v868_v29, %v779_v47  ;;  %v895_v50 = vmul.f32 %v892_v30, %v779_v47  ;;  %v945_v9 = vld [vmem:[%s1880_s11 + $0x28] sm:$0xff]  ;;  %v947_v14 = vld [vmem:[%s1880_s11 + $0x38] sm:$0xff]  ;;  %v948_v32 = vld [vmem:[%s1880_s11 + $0x40] sm:$0xff] }
 0x32f   : > { %899 = vmatpush.bf16.msra.mxu2 %v1404_v22  ;;  %923 = vmatpush.bf16.msra.mxu3 %v1404_v22  ;;  %v784_v43 = vpack.c.bf16 %v782_v35, %v781_v34  ;;  %v872_v44 = vpack.c.bf16 %v870_v37, %v869_v36  ;;  %v896_v45 = vpack.c.bf16 %v894_v40, %v893_v38  ;;  %v946_v36 = vld [vmem:[%s1880_s11 + $0x30] sm:$0xff] }
 0x330   : > { %v920_v46 = vpack.c.bf16 %v918_v42, %v917_v41  ;;  %v919_v51 = vmul.f32 %v916_v33, %v779_v47  ;;  %v785_v52 = vpack.c.bf16 %v783_v48, %v783_v48  ;;  %v873_v53 = vpack.c.bf16 %v871_v49, %v871_v49 }
 0x331   : > { %v897_v54 = vpack.c.bf16 %v895_v50, %v895_v50 }
 0x332   : > { %852 = vmatpush.bf16.msra.mxu0 %v1403_v23  ;;  %876 = vmatpush.bf16.msra.mxu1 %v1403_v23  ;;  %v921_v55 = vpack.c.bf16 %v919_v51, %v919_v51 }
 0x333   : > { %900 = vmatpush.bf16.msra.mxu2 %v1403_v23  ;;  %924 = vmatpush.bf16.msra.mxu3 %v1403_v23  ;;  %v944_v23 = vld [vmem:[%s1880_s11 + $0x20] sm:$0xff] }
 0x336   : > { %853 = vmatpush.bf16.msra.mxu0 %v1402_v24  ;;  %877 = vmatpush.bf16.msra.mxu1 %v1402_v24 }
 0x337   : > { %901 = vmatpush.bf16.msra.mxu2 %v1402_v24  ;;  %925 = vmatpush.bf16.msra.mxu3 %v1402_v24 }
 0x33a   : > { %854 = vmatpush.bf16.msra.mxu0 %v1401_v25  ;;  %878 = vmatpush.bf16.msra.mxu1 %v1401_v25 }
 0x33b   : > { %902 = vmatpush.bf16.msra.mxu2 %v1401_v25  ;;  %926 = vmatpush.bf16.msra.mxu3 %v1401_v25 }
 0x33e   : > { %855 = vmatpush.bf16.msra.mxu0 %v1400_v26  ;;  %879 = vmatpush.bf16.msra.mxu1 %v1400_v26 }
 0x33f   : > { %903 = vmatpush.bf16.msra.mxu2 %v1400_v26  ;;  %927 = vmatpush.bf16.msra.mxu3 %v1400_v26 }
 0x342   : > { %856 = vmatpush.bf16.msra.mxu0 %v1399_v31  ;;  %880 = vmatpush.bf16.msra.mxu1 %v1399_v31 }
 0x343   : > { %904 = vmatpush.bf16.msra.mxu2 %v1399_v31  ;;  %928 = vmatpush.bf16.msra.mxu3 %v1399_v31 }
 0x346   : > { %857 = vmatpush.bf16.msra.mxu0 %v1398_v39  ;;  %881 = vmatpush.bf16.msra.mxu1 %v1398_v39 }
 0x347   : > { %905 = vmatpush.bf16.msra.mxu2 %v1398_v39  ;;  %929 = vmatpush.bf16.msra.mxu3 %v1398_v39 }
 0x349   : > { %858 = vmatmul.bf16.vlgmr.msra.gmra.mxu0 %v784_v43  ;;  %882 = vmatmul.bf16.vlgmr.msra.gmra.mxu1 %v872_v44 }
 0x34a   : > { %906 = vmatmul.bf16.vlgmr.msra.gmra.mxu2 %v896_v45  ;;  %930 = vmatmul.bf16.vlgmr.msra.gmra.mxu3 %v920_v46 }
 0x359   : > { %863 = vmatmul.bf16.gmra.mxu0 %v785_v52  ;;  %887 = vmatmul.bf16.gmra.mxu1 %v873_v53 }
 0x35a   : > { %911 = vmatmul.bf16.gmra.mxu2 %v897_v54  ;;  %935 = vmatmul.bf16.gmra.mxu3 %v921_v55 }
 0x3c6   : > { %v859_v57 = vpop.f32.mrf.mxu0  ;;  %v883_v58 = vpop.f32.mrf.mxu1 }
 0x3c7   : > { %v986_v59 = vadd.f32 %v940_v56, %v859_v57  ;;  %v952_v1 = vrot.slane %v883_v58, 6 }
 0x3c9   : > { %995 = vst.msk [vmem:[%s1880_s11] sm:$0xff] %vm755_vm9, %v986_v59 }
 0x3cd   : > { %v907_v61 = vpop.f32.mrf.mxu2  ;;  %v931_v62 = vpop.f32.mrf.mxu3 }
 0x3ce   : > { %v861_v63 = vpop.f32.mrf.mxu0  ;;  %v885_v0 = vpop.f32.mrf.mxu1  ;;  %v963_v10 = vrot.slane %v907_v61, 4  ;;  %v975_v13 = vrot.slane %v931_v62, 2 }
 0x3cf   : > { %v987_v2 = vadd.f32 %v941_v60, %v861_v63  ;;  %v953_v4 = vrot.slane %v885_v0, 6 }
 0x3d1   : > { %996 = vst.msk [vmem:[%s1880_s11 + $0x8] sm:$0xff] %vm755_vm9, %v987_v2  ;;  %v954_v5 = vsel %vm640_vm7, %v952_v1, %v953_v4 }
 0x3d2   : > { %v989_v6 = vadd.f32 %v954_v5, %v943_v3 }
 0x3d4   : > { %998 = vst.msk [vmem:[%s1880_s11 + $0x18] sm:$0xff] %vm755_vm9, %v989_v6 }
 0x3d5   : > { %v909_v7 = vpop.f32.mrf.mxu2  ;;  %v933_v12 = vpop.f32.mrf.mxu3 }
 0x3d6   : > { %v964_v11 = vrot.slane %v909_v7, 4  ;;  %v976_v15 = vrot.slane %v933_v12, 2  ;;  %v864_v16 = vpop.f32.mrf.mxu0  ;;  %v888_v17 = vpop.f32.mrf.mxu1 }
 0x3d7   : > { %v983_v18 = vsel %vm640_vm7, %v864_v16, %v952_v1  ;;  %v955_v19 = vrot.slane %v888_v17, 6 }
 0x3d8   : > { %v965_v20 = vsel %vm491_vm1, %v963_v10, %v964_v11  ;;  %v977_v21 = vsel %vm974_vm10, %v975_v13, %v976_v15  ;;  %v988_v22 = vadd.f32 %v983_v18, %v942_v8 }
 0x3d9   : > { %v991_v24 = vadd.f32 %v965_v20, %v945_v9  ;;  %v993_v25 = vadd.f32 %v977_v21, %v947_v14  ;;  %v956_v26 = vsel %vm640_vm7, %v953_v4, %v955_v19 }
 0x3da   : > { %997 = vst.msk [vmem:[%s1880_s11 + $0x10] sm:$0xff] %vm755_vm9, %v988_v22  ;;  %v984_v27 = vsel %vm491_vm1, %v956_v26, %v963_v10 }
 0x3db   : > { %1000 = vst.msk [vmem:[%s1880_s11 + $0x28] sm:$0xff] %vm755_vm9, %v991_v24  ;;  %v990_v28 = vadd.f32 %v984_v27, %v944_v23 }
 0x3dc   : > { %1002 = vst.msk [vmem:[%s1880_s11 + $0x38] sm:$0xff] %vm755_vm9, %v993_v25 }
 0x3dd   : > { %999 = vst.msk [vmem:[%s1880_s11 + $0x20] sm:$0xff] %vm755_vm9, %v990_v28  ;;  %v912_v29 = vpop.f32.mrf.mxu2  ;;  %v936_v30 = vpop.f32.mrf.mxu3 }
 0x3de   : > { %v966_v31 = vrot.slane %v912_v29, 4  ;;  %v978_v33 = vrot.slane %v936_v30, 2  ;;  %v866_v34 = vpop.f32.mrf.mxu0  ;;  %v890_v35 = vpop.f32.mrf.mxu1 }
 0x3e0   : > { %v967_v37 = vsel %vm491_vm1, %v964_v11, %v966_v31  ;;  %v979_v38 = vsel %vm974_vm10, %v976_v15, %v978_v33 }
 0x3e1   : > { %v985_v39 = vsel %vm974_vm10, %v967_v37, %v975_v13  ;;  %v994_v40 = vadd.f32 %v979_v38, %v948_v32 }
 0x3e2   : > { %v992_v41 = vadd.f32 %v985_v39, %v946_v36 }
 0x3e3   : > { %1003 = vst.msk [vmem:[%s1880_s11 + $0x40] sm:$0xff] %vm755_vm9, %v994_v40 }
 0x3e4   : > { %1001 = vst.msk [vmem:[%s1880_s11 + $0x30] sm:$0xff] %vm755_vm9, %v992_v41 }
 0x3e5   : > { %v914_v42 = vpop.f32.mrf.mxu2  ;;  %v938_v43 = vpop.f32.mrf.mxu3 }
 0x3e6 PF: > { %v1014_v44 = vld [vmem:[%s1878_s9 + $0x18] sm:$0xff]  ;;  %v1012_v45 = vld [vmem:[%s1878_s9 + $0x8] sm:$0xff]  ;;  %v1494_v46 = vmov 0   ;;  %v1039_v47 = vld [vmem:[%s1877_s8] sm:$0x3]  ;;  %s1495_s27 = smov 16  }
 0x3e7   : > { %1461 = vset.pattern.permute.xlu1 %v1494_v46  ;;  %1460 = vset.pattern.permute.xlu0 %v1494_v46  ;;  %v1040_v48 = vunpack.c.l.bf16 %v1039_v47  ;;  %v1013_v49 = vld [vmem:[%s1878_s9 + $0x10] sm:$0xff]  ;;  %v1011_v50 = vld [vmem:[%s1878_s9] sm:$0xff]  ;;  %vm1047_vm11 = vcmask 130048   ;;  %vm1053_vm12 = vcmask 261120   ;;  %v1415_v21 = vld [vmem:[%s1876_s7 + $0x8] sm:$0xff]  }
 0x3e8   : > { %1032 = vperm.xlu0 %1460, %v1014_v44   ;;  %1022 = vperm.xlu1 %1461, %v1012_v45   ;;  %v1008_v57 = vld [vmem:[#allocation3 + $0x8] sm:$0xff]  ;;  %v1009_v58 = vld [vmem:[#allocation3 + $0x10] sm:$0xff]  ;;  %v1007_v61 = vld [vmem:[#allocation3] sm:$0xff]  ;;  %v1414_v26 = vunpack.c.h.bf16 %v1415_v21  ;;  %v1413_v27 = vunpack.c.l.bf16 %v1415_v21 }
 0x3e9   : > { %1042 = vst [vmem:[#allocation1] ss:$2 sm:$0xff] %v1040_v48  ;;  %v1408_v20 = vld [vmem:[%s1876_s7] sm:$0xff]  }
 0x3ea   : > { %v1409_v23 = vunpack.c.l.bf16 %v1408_v20  ;;  %v1410_v25 = vunpack.c.h.bf16 %v1408_v20 }
 0x3ec   : > { %v1010_v52 = vld [vmem:[#allocation3 + $0x18] sm:$0xff] }
 0x3f0   : > { %1027 = vperm.xlu0 %1460, %v1013_v49   ;;  %1017 = vperm.xlu1 %1461, %v1011_v50   ;;  %v1043_v51 = vld.sshfl [vmem:[#allocation1] sm:$0xff pattern:$0x75316420] }
 0x3f1   : > { %1044 = vrot.lane.b32.xlu2 %v1043_v51, %s1495_s27 }
 0x44b   : > { %v1045_v2 = vpop.permute.xlu2 %1044 }
 0x44c   : > { %v1048_v5 = vsel %vm1047_vm11, %v1040_v48, %v1045_v2 }
 0x45a   : > { %v1033_v53 = vpop.permute.xlu0 %1032  ;;  %v1023_v54 = vpop.permute.xlu1 %1022 }
 0x45b   : > { %v1038_v55 = vadd.f32 %v1033_v53, %v1010_v52  ;;  %v1036_v62 = vadd.f32 %v1023_v54, %v1008_v57 }
 0x45d   : > { %v1052_v56 = vmul.f32 %v1038_v55, %v1038_v55  ;;  %v1050_v3 = vmul.f32 %v1036_v62, %v1036_v62 }
 0x45f   : > { %1069 = vmatpush.msra.mxu0 %v1052_v56 }
 0x462   : > { %v1028_v59 = vpop.permute.xlu0 %1027  ;;  %v1018_v60 = vpop.permute.xlu1 %1017 }
 0x463   : > { %v1037_v63 = vadd.f32 %v1028_v59, %v1009_v58  ;;  %v1035_v0 = vadd.f32 %v1018_v60, %v1007_v61 }
 0x465   : > { %v1051_v1 = vmul.f32 %v1037_v63, %v1037_v63  ;;  %v1049_v4 = vmul.f32 %v1035_v0, %v1035_v0 }
 0x467   : > { %1070 = vmatpush.msra.mxu0 %v1051_v1 }
 0x469   : > { %1071 = vmatpush.msra.mxu0 %v1050_v3 }
 0x46b   : > { %1072 = vmatpush.msra.mxu0 %v1049_v4 }
 0x46c   : > { %1376 = vmatmul.msk.f32.vlgmr.msra.gmra.mxu0 %vm1053_vm12, %v1048_v5 }
 0x4e9   : > { %v1074_v6 = vpop.f32.mrf.mxu0 }
 0x4ea   : > { %1462 = vrsqrt.f32 %v1074_v6  ;;  %vm1085_vm13 = vcmp.eq.f32.partialorder %v1074_v6, inf  ;;  %v1088_v14 = vand.u32 2147483648, %v1074_v6  ;;  %vm1087_vm14 = vcmp.eq.f32.partialorder %v1074_v6, 0.0 }
 0x4eb   : > { %v1077_v17 = vadd.f32 1.0, %v1074_v6 }
 0x4f0   : > { %v1463_v7 = vpop.eup %1462 }
 0x4f1   : > { %v1079_v12 = vmul.f32 %v1463_v7, %v1074_v6 }
 0x4f3   : > { %v1080_v8 = vmul.f32 %v1463_v7, %v1079_v12 }
 0x4f5   : > { %v1081_v10 = vmul.f32 0.5, %v1080_v8 }
 0x4f7   : > { %v1082_v13 = vsub.f32 1.5, %v1081_v10 }
 0x4f9   : > { %v1083_v9 = vmul.f32 %v1463_v7, %v1082_v13 }
 0x4fb   : > { %v1084_v11 = vmul.f32 %v1083_v9, %v1074_v6 }
 0x4fd   : > { %v1086_v15 = vsel %vm1085_vm13, %v1074_v6, %v1084_v11 }
 0x4fe   : > { %v1089_v16 = vsel %vm1087_vm14, %v1088_v14, %v1086_v15 }
 0x4ff   : > { %v1090_v18 = vadd.f32 1e-08, %v1089_v16 }
 0x501   : > { %v1091_v19 = vmul.f32 %v1090_v18, %v1077_v17 }
 0x503   : > { %1464 = vrcp.f32 %v1091_v19 }
 0x509   : > { %v1465_v22 = vpop.eup %1464 }
 0x50a   : > { %v1093_v24 = vmul.f32 %v1465_v22, %v1074_v6 }
 0x50c   : > { %1377 = vmatpush.msk.msra.mxu1 %vm491_vm1, %v1093_v24  ;;  %1424 = vmatpush.msk.msra.mxu2 %vm491_vm1, %v1093_v24 }
 0x50d   : > { %1425 = vmatpush.msk.msra.mxu3 %vm491_vm1, %v1093_v24  ;;  %1378 = vmatmul.msk.f32.vlgmr.msra.gmra.mxu1 %vm633_vm8, %v1409_v23 }
 0x50e   : > { %1379 = vmatmul.msk.f32.vlgmr.msra.gmra.mxu2 %vm633_vm8, %v1410_v25  ;;  %1381 = vmatmul.msk.f32.vlgmr.msra.gmra.mxu3 %vm633_vm8, %v1414_v26 }
 0x516   : > { %1380 = vmatmul.msk.f32.gmra.mxu2 %vm633_vm8, %v1413_v27 }
 0x58a   : > { %v1134_v28 = vpop.f32.mrf.mxu1 }
 0x58b   : > { %v1146_v29 = vmul.f32 %v1134_v28, %v1035_v0 }
 0x58d   : > { %1150 = vst.msk [vmem:[#allocation4] sm:$0xff] %vm755_vm9, %v1146_v29 }
 0x591   : > { %v1137_v30 = vpop.f32.mrf.mxu2  ;;  %v1143_v31 = vpop.f32.mrf.mxu3 }
 0x592   : > { %v1147_v32 = vmul.f32 %v1137_v30, %v1036_v62  ;;  %v1149_v33 = vmul.f32 %v1143_v31, %v1038_v55 }
 0x594   : > { %1151 = vst.msk [vmem:[#allocation4 + $0x8] sm:$0xff] %vm755_vm9, %v1147_v32  ;;  %v1158_v36 = vld [vmem:[#allocation4] sm:$0xff] (%p773_p7) }
 0x595   : > { %1153 = vst.msk [vmem:[#allocation4 + $0x18] sm:$0xff] %vm755_vm9, %v1149_v33 }
 0x596   : > { %1162 = vst.msk [vmem:[%s1879_s10] sm:$0xff] (%p773_p7), %vm755_vm9, %v1158_v36 }
 0x598   : > { %1157 = sbr.rel (!%p773_p7) target bundleno = 1445 (0x5a5), region = 88 }
 0x599   : > { %v1140_v34 = vpop.f32.mrf.mxu2 }
 0x59a   : > { %v1148_v35 = vmul.f32 %v1140_v34, %v1037_v63 }
 0x59b   : > { %v1159_v37 = vld [vmem:[#allocation4 + $0x8] sm:$0xff] (%p773_p7) }
 0x59c   : > { %1152 = vst.msk [vmem:[#allocation4 + $0x10] sm:$0xff] %vm755_vm9, %v1148_v35  ;;  %v1161_v39 = vld [vmem:[#allocation4 + $0x18] sm:$0xff] (%p773_p7) }
 0x59d   : > { %1163 = vst.msk [vmem:[%s1879_s10 + $0x8] sm:$0xff] %vm755_vm9, %v1159_v37 }
 0x59e   : > { %1165 = vst.msk [vmem:[%s1879_s10 + $0x18] sm:$0xff] %vm755_vm9, %v1161_v39 }
 0x5a3   : > { %v1160_v38 = vld [vmem:[#allocation4 + $0x10] sm:$0xff] }
 0x5a4   : > { %1164 = vst.msk [vmem:[%s1879_s10 + $0x10] sm:$0xff] %vm755_vm9, %v1160_v38 }
 0x5a5 PF: > { %s22_s19 = sadd.s32 1, %s1488_s19   ;;  %s1881_s17 = smov %s1484_s18 }
 0x5a6   : > { %p19_p9 = scmp.ge.s32.totalorder %s22_s19, 5   ;;  %s1882_s18 = smov %s1884_s20 }
 0x5a8   :  { %21 = sbr.rel (!%p19_p9) target bundleno = 2 (0x2), region = 137 }

</bundles_post_ra>
